<compile_context>
chip_gen: v7x
topology: tpu7x:2x2x1
jax: 0.10.0
libtpu: 0.0.40
codegen_flags: <defaults>
</compile_context>

<pallas_src>
import jax
import jax.numpy as jnp
from jax.experimental import pallas as pl
from jax.experimental.pallas import tpu as pltpu

F_PAD = 128           # padded feature width (input, hidden, output)
MAX_TB = 512          # batch row-block (tiny VMEM footprint on every chip)


def _round_up(x, m):
    return ((x + m - 1) // m) * m


def _mlp_kernel(x_ref, w_ref, b_ref, o_ref):
    """x_ref: [TB,128] bf16, w_ref: [3,128,128] bf16, b_ref: [8,128] f32."""
    x = x_ref[...]

    # fc1 + ReLU   (dropout1 == identity in eval mode)
    h1 = jnp.dot(x, w_ref[0], preferred_element_type=jnp.float32)
    h1 = jnp.maximum(h1 + b_ref[0:1, :], 0.0)

    # fc2 + ReLU   (dropout2 == identity in eval mode)
    h2 = jnp.dot(h1.astype(w_ref.dtype), w_ref[1],
                 preferred_element_type=jnp.float32)
    h2 = jnp.maximum(h2 + b_ref[1:2, :], 0.0)

    # fc3
    out = jnp.dot(h2.astype(w_ref.dtype), w_ref[2],
                  preferred_element_type=jnp.float32)
    o_ref[...] = (out + b_ref[2:3, :]).astype(o_ref.dtype)


def pack_params(params, weight_dtype=jnp.bfloat16):
    """Pack (w1,b1,w2,b2,w3,b3) into one weight slab and one bias slab.

    Weights are [in, out]; each is zero-padded to [128, 128] and stacked ->
    [3, 128, 128].  Biases are zero-padded rows of an [8, 128] f32 slab.
    """
    w1, b1, w2, b2, w3, b3 = params
    assert max(w1.shape + w2.shape + w3.shape) <= F_PAD

    def pad_w(w):
        out = jnp.zeros((F_PAD, F_PAD), jnp.float32)
        return out.at[: w.shape[0], : w.shape[1]].set(w)

    w_slab = jnp.stack([pad_w(w1), pad_w(w2), pad_w(w3)]).astype(weight_dtype)

    b_slab = jnp.zeros((8, F_PAD), jnp.float32)
    b_slab = b_slab.at[0, : b1.shape[1]].set(b1[0])
    b_slab = b_slab.at[1, : b2.shape[1]].set(b2[0])
    b_slab = b_slab.at[2, : b3.shape[1]].set(b3[0])
    return w_slab, b_slab


def network_forward(state, packed, action_size):
    """state: [B, state_size] float32 -> [B, action_size] float32."""
    w_slab, b_slab = packed
    B, S = state.shape

    # Batch tiling: small batches -> one (>=8-row) block; large batches get
    # 512-row blocks so BlockSpec double-buffering overlaps the x/out DMAs and
    # the per-grid-step overhead is amortized.
    tb = MAX_TB if B >= MAX_TB else _round_up(B, 8)
    b_pad = _round_up(B, tb)

    # Lane-dense, bf16 input slab [B_pad, 128]; zero padding is harmless.
    x = jnp.pad(state.astype(w_slab.dtype), ((0, b_pad - B), (0, F_PAD - S)))

    out = pl.pallas_call(
        _mlp_kernel,
        out_shape=jax.ShapeDtypeStruct((b_pad, F_PAD), jnp.float32),
        grid=(b_pad // tb,),
        in_specs=[
            pl.BlockSpec((tb, F_PAD), lambda i: (i, 0)),           # x block
            pl.BlockSpec(w_slab.shape, lambda i: (0, 0, 0)),       # resident
            pl.BlockSpec(b_slab.shape, lambda i: (0, 0)),          # resident
        ],
        out_specs=pl.BlockSpec((tb, F_PAD), lambda i: (i, 0)),     # lane-dense
        compiler_params=pltpu.CompilerParams(
            dimension_semantics=("parallel",)),                    # v7x: 2 TCs
    )(x, w_slab, b_slab)

    return out[:B, :action_size]


def init_params(key, state_size, action_size):
    """Deterministic init mirroring nn.Linear's U(-1/sqrt(fan_in), 1/sqrt(fan_in))."""
    def linear(k, fan_in, fan_out):
        kw, kb = jax.random.split(k)
        bound = 1.0 / jnp.sqrt(jnp.float32(fan_in))
        # stored as [in, out] so the kernel computes x @ W
        w = jax.random.uniform(kw, (fan_in, fan_out), jnp.float32, -bound, bound)
        b = jax.random.uniform(kb, (1, fan_out), jnp.float32, -bound, bound)
        return w, b

    k1, k2, k3 = jax.random.split(key, 3)
    w1, b1 = linear(k1, state_size, 64)
    w2, b2 = linear(k2, 64, 64)
    w3, b3 = linear(k3, 64, action_size)
    return (w1, b1, w2, b2, w3, b3)


if __name__ == "__main__":
    key = jax.random.PRNGKey(0)
    state_size = 8      # LunarLander-v2 observation size
    action_size = 4     # LunarLander-v2 (discrete) action size
    batch = 8

    k_params, k_state = jax.random.split(key)
    params = init_params(k_params, state_size, action_size)
    state = jax.random.normal(k_state, (batch, state_size), dtype=jnp.float32)

    packed = pack_params(params, weight_dtype=jnp.bfloat16)
    out = network_forward(state, packed, action_size)
    jax.block_until_ready(out)

    # Reference 1: same packed bf16 weights, plain-JAX forward (tight check).
    w_slab, b_slab = packed
    xb = jnp.pad(state.astype(jnp.bfloat16),
                 ((0, 0), (0, F_PAD - state_size)))
    h = jnp.maximum(
        jnp.dot(xb, w_slab[0], preferred_element_type=jnp.float32)
        + b_slab[0:1], 0.0)
    h = jnp.maximum(
        jnp.dot(h.astype(jnp.bfloat16), w_slab[1],
                preferred_element_type=jnp.float32) + b_slab[1:2], 0.0)
    ref_bf16 = (jnp.dot(h.astype(jnp.bfloat16), w_slab[2],
                        preferred_element_type=jnp.float32)
                + b_slab[2:3])[:, :action_size]

    # Reference 2: full-f32 PyTorch-equivalent forward (loose tol accounts for
    # the bf16 weight/activation rounding).
    w1, b1, w2, b2, w3, b3 = params
    ref_f32 = jnp.maximum(state @ w1 + b1, 0.0)
    ref_f32 = jnp.maximum(ref_f32 @ w2 + b2, 0.0)
    ref_f32 = ref_f32 @ w3 + b3

    assert out.shape == (batch, action_size)
    assert jnp.allclose(out, ref_bf16, atol=1e-3, rtol=1e-3)
    assert jnp.allclose(out, ref_f32, atol=5e-2, rtol=5e-2)

    print("KERNEL_OK")
</pallas_src>

<mosaic_0001>
module attributes {stable_mosaic.version = 11 : i64} {
  func.func @_mlp_kernel(%arg0: i32, %arg1: memref<8x128xbf16, #tpu.memory_space<vmem>>, %arg2: memref<3x128x128xbf16, #tpu.memory_space<vmem>>, %arg3: memref<8x128xf32, #tpu.memory_space<vmem>>, %arg4: memref<8x128xf32, #tpu.memory_space<vmem>>) attributes {dimension_semantics = [#tpu.dimension_semantics<parallel>], iteration_bounds = array<i64: 1>, scalar_prefetch = 0 : i64, scratch_operands = 0 : i64, tpu.core_type = #tpu.core_type<tc>, window_params = [{transform_indices = @transform_0, window_bounds = array<i64: 8, 128>}, {pipeline_mode = #tpu.pipeline_mode<synchronous>, transform_indices = @transform_1, window_bounds = array<i64: 3, 128, 128>}, {pipeline_mode = #tpu.pipeline_mode<synchronous>, transform_indices = @transform_2, window_bounds = array<i64: 8, 128>}, {transform_indices = @transform_3, window_bounds = array<i64: 8, 128>}]} {
    %c0 = arith.constant 0 : index
    %c0_0 = arith.constant 0 : index
    %0 = vector.load %arg1[%c0, %c0_0] : memref<8x128xbf16, #tpu.memory_space<vmem>>, vector<8x128xbf16>
    %c0_1 = arith.constant 0 : index
    %c0_2 = arith.constant 0 : index
    %c0_3 = arith.constant 0 : index
    %1 = vector.load %arg2[%c0_1, %c0_2, %c0_3] : memref<3x128x128xbf16, #tpu.memory_space<vmem>>, vector<1x128x128xbf16>
    %2 = vector.shape_cast %1 : vector<1x128x128xbf16> to vector<128x128xbf16>
    %cst = arith.constant dense<0.000000e+00> : vector<8x128xf32>
    %3 = tpu.matmul %0, %2, %cst {dimension_numbers = #tpu.dot_dimension_numbers<[1], [0], [0], [1], [0, 0, 1, 1], [], []>} : vector<8x128xbf16>, vector<128x128xbf16>, vector<8x128xf32> -> vector<8x128xf32>
    %c0_4 = arith.constant 0 : index
    %c0_5 = arith.constant 0 : index
    %4 = vector.load %arg3[%c0_4, %c0_5] : memref<8x128xf32, #tpu.memory_space<vmem>>, vector<1x128xf32>
    %5 = vector.broadcast %4 : vector<1x128xf32> to vector<8x128xf32>
    %6 = arith.addf %3, %5 : vector<8x128xf32>
    %cst_6 = arith.constant 0.000000e+00 : f32
    %7 = vector.broadcast %cst_6 : f32 to vector<8x128xf32>
    %8 = arith.maximumf %6, %7 : vector<8x128xf32>
    %9 = arith.truncf %8 : vector<8x128xf32> to vector<8x128xbf16>
    %c1 = arith.constant 1 : index
    %c0_7 = arith.constant 0 : index
    %c0_8 = arith.constant 0 : index
    %10 = vector.load %arg2[%c1, %c0_7, %c0_8] : memref<3x128x128xbf16, #tpu.memory_space<vmem>>, vector<1x128x128xbf16>
    %11 = vector.shape_cast %10 : vector<1x128x128xbf16> to vector<128x128xbf16>
    %cst_9 = arith.constant dense<0.000000e+00> : vector<8x128xf32>
    %12 = tpu.matmul %9, %11, %cst_9 {dimension_numbers = #tpu.dot_dimension_numbers<[1], [0], [0], [1], [0, 0, 1, 1], [], []>} : vector<8x128xbf16>, vector<128x128xbf16>, vector<8x128xf32> -> vector<8x128xf32>
    %c1_10 = arith.constant 1 : index
    %c0_11 = arith.constant 0 : index
    %13 = vector.load %arg3[%c1_10, %c0_11] : memref<8x128xf32, #tpu.memory_space<vmem>>, vector<1x128xf32>
    %14 = vector.broadcast %13 : vector<1x128xf32> to vector<8x128xf32>
    %15 = arith.addf %12, %14 : vector<8x128xf32>
    %cst_12 = arith.constant 0.000000e+00 : f32
    %16 = vector.broadcast %cst_12 : f32 to vector<8x128xf32>
    %17 = arith.maximumf %15, %16 : vector<8x128xf32>
    %18 = arith.truncf %17 : vector<8x128xf32> to vector<8x128xbf16>
    %c2 = arith.constant 2 : index
    %c0_13 = arith.constant 0 : index
    %c0_14 = arith.constant 0 : index
    %19 = vector.load %arg2[%c2, %c0_13, %c0_14] : memref<3x128x128xbf16, #tpu.memory_space<vmem>>, vector<1x128x128xbf16>
    %20 = vector.shape_cast %19 : vector<1x128x128xbf16> to vector<128x128xbf16>
    %cst_15 = arith.constant dense<0.000000e+00> : vector<8x128xf32>
    %21 = tpu.matmul %18, %20, %cst_15 {dimension_numbers = #tpu.dot_dimension_numbers<[1], [0], [0], [1], [0, 0, 1, 1], [], []>} : vector<8x128xbf16>, vector<128x128xbf16>, vector<8x128xf32> -> vector<8x128xf32>
    %c2_16 = arith.constant 2 : index
    %c0_17 = arith.constant 0 : index
    %22 = vector.load %arg3[%c2_16, %c0_17] : memref<8x128xf32, #tpu.memory_space<vmem>>, vector<1x128xf32>
    %23 = vector.broadcast %22 : vector<1x128xf32> to vector<8x128xf32>
    %24 = arith.addf %21, %23 : vector<8x128xf32>
    %c0_18 = arith.constant 0 : index
    %c0_19 = arith.constant 0 : index
    %25 = vector.load %arg4[%c0_18, %c0_19] : memref<8x128xf32, #tpu.memory_space<vmem>>, vector<8x128xf32>
    tpu.vector_store %arg4[%c0_18, %c0_19], %24 {strides = array<i32>} : memref<8x128xf32, #tpu.memory_space<vmem>>, vector<8x128xf32>,
    return
  }
  func.func @transform_0(%arg0: i32) -> (i32, i32) {
    %c0_i32 = arith.constant 0 : i32
    %c0_i32_0 = arith.constant 0 : i32
    return %arg0, %c0_i32 : i32, i32
  }
  func.func @transform_1(%arg0: i32) -> (i32, i32, i32) {
    %c0_i32 = arith.constant 0 : i32
    %c0_i32_0 = arith.constant 0 : i32
    %c0_i32_1 = arith.constant 0 : i32
    %c0_i32_2 = arith.constant 0 : i32
    return %c0_i32, %c0_i32_0, %c0_i32_1 : i32, i32, i32
  }
  func.func @transform_2(%arg0: i32) -> (i32, i32) {
    %c0_i32 = arith.constant 0 : i32
    %c0_i32_0 = arith.constant 0 : i32
    %c0_i32_1 = arith.constant 0 : i32
    return %c0_i32, %c0_i32_0 : i32, i32
  }
  func.func @transform_3(%arg0: i32) -> (i32, i32) {
    %c0_i32 = arith.constant 0 : i32
    %c0_i32_0 = arith.constant 0 : i32
    return %arg0, %c0_i32 : i32, i32
  }
}

</mosaic_0001>

<bundles_post_ra>
// kernel: tpu_custom_call.1
= control target key start
LH: loop header
LB: loop body
LE: loop exit
PB: predicated region body
PF: predicated region fallthrough
CT: control target
= control target key end

     0   :  { %8 = vsyncpa [#allocation3], 0  ;;  %s750_s0 = inlined_call_operand.hbm [shape: bf16[8,128], index: 0, kind: input, shape index: {}]   ;;  %s751_s1 = inlined_call_operand.hbm [shape: bf16[3,128,128], index: 1, kind: input, shape index: {}]   ;;  %s752_s2 = inlined_call_operand.hbm [shape: f32[8,128], index: 2, kind: input, shape index: {}]   ;;  %s753_s3 = inlined_call_operand.hbm [shape: f32[8,128], index: 3, kind: output, shape index: {}]  }
   0x1   :  { %9 = vsyncpa [#allocation6], 0 }
   0x2   :  { %10 = vsyncpa [#allocation4], 0  ;;  %s644_s12 = smov [#allocation5]   ;;  %s550_s16 = scalar_lea.hbm %s751_s1, 3072 }
   0x3   :  { %s26_s13 = sshll.u32 %s644_s12, 4  ;;  %p551_p0 = scmp.ne.s32.totalorder %s751_s1, %s550_s16  ;;  %s27_s13 = int_to_ptr.vmem [resolvable:$true] %s26_s13 }
   0x4   :  { %p554_p1 = scmp.lt.u32.totalorder %s550_s16, %s751_s1 }
   0x6   :  { %p556_p2 = pnand %p554_p1, %p551_p0 }
   0x8   :  { %559 = shalt.err (!%p556_p2)
}
   0x9   :  { %s560_s21 = scalar_lea.vmem %s27_s13, 3072  ;;  %p565_p4 = scmp.lt.s32.totalorder %s27_s13, %s27_s13 }
   0xa   :  { %p561_p3 = scmp.ne.s32.totalorder %s27_s13, %s560_s21  ;;  %p566_p5 = scmp.lt.s32.totalorder %s560_s21, %s560_s21 }
   0xc   :  { %p567_p6 = por %p566_p5, %p565_p4 }
   0xe   :  { %p568_p7 = pnand %p567_p6, %p561_p3 }
  0x10   :  { %571 = shalt.err (!%p568_p7)
}
  0x11   :  { %s645_s22 = smov 64   ;;  %s646_s23 = smov 4  }
  0x12   :  { %32 = dma.hbm_to_vmem [thread:$0]  %s751_s1, 3072, %s27_s13, [#allocation6], %s645_s22, %s645_s22, %s646_s23  }
  0x13   :  { %s647_s26 = smov [#allocation2]   ;;  %s648_s28 = smov [#allocation7]  }
  0x14   :  { %s17_s27 = sshll.u32 %s647_s26, 4  ;;  %s39_s29 = sshll.u32 %s648_s28, 4  ;;  %s18_s27 = int_to_ptr.vmem [resolvable:$true] %s17_s27  ;;  %s40_s29 = int_to_ptr.vmem [resolvable:$true] %s39_s29 }
  0x15   :  { %s572_s5 = scalar_lea.hbm %s750_s0, 64 }
  0x16   :  { %p573_p8 = scmp.ne.s32.totalorder %s750_s0, %s572_s5  ;;  %p576_p9 = scmp.lt.u32.totalorder %s572_s5, %s750_s0 }
  0x18   :  { %p578_p10 = pnand %p576_p9, %p573_p8 }
  0x1a   :  { %581 = shalt.err (!%p578_p10)
}
  0x1b   :  { %s582_s1 = scalar_lea.vmem %s18_s27, 64  ;;  %p587_p12 = scmp.lt.s32.totalorder %s18_s27, %s18_s27 }
  0x1c   :  { %p583_p11 = scmp.ne.s32.totalorder %s18_s27, %s582_s1  ;;  %p588_p13 = scmp.lt.s32.totalorder %s582_s1, %s582_s1 }
  0x1e   :  { %p589_p0 = por %p588_p13, %p587_p12 }
  0x20   :  { %p590_p1 = pnand %p589_p0, %p583_p11 }
  0x22   :  { %593 = shalt.err (!%p590_p1)
}
  0x23   :  { %20 = dma.hbm_to_vmem [thread:$0]  %s750_s0, 64, %s18_s27, [#allocation3]  }
  0x24   :  { %s594_s14 = scalar_lea.hbm %s752_s2, 128 }
  0x25   :  { %p595_p2 = scmp.ne.s32.totalorder %s752_s2, %s594_s14  ;;  %p598_p3 = scmp.lt.u32.totalorder %s594_s14, %s752_s2 }
  0x27   :  { %p600_p4 = pnand %p598_p3, %p595_p2 }
  0x29   :  { %603 = shalt.err (!%p600_p4)
}
  0x2a   :  { %s604_s19 = scalar_lea.vmem %s40_s29, 128  ;;  %p609_p6 = scmp.lt.s32.totalorder %s40_s29, %s40_s29 }
  0x2b   :  { %p605_p5 = scmp.ne.s32.totalorder %s40_s29, %s604_s19  ;;  %p610_p7 = scmp.lt.s32.totalorder %s604_s19, %s604_s19 }
  0x2d   :  { %p611_p8 = por %p610_p7, %p609_p6 }
  0x2f   :  { %p612_p9 = pnand %p611_p8, %p605_p5 }
  0x31   :  { %615 = shalt.err (!%p612_p9)
}
  0x32   :  { %42 = dma.hbm_to_vmem [thread:$0]  %s752_s2, 128, %s40_s29, [#allocation6]  }
  0x33   :  { %638 = dma.done.wait [#allocation3], 64  }
  0x34   :  { %639 = vsyncadd [#allocation3], 4294967232 }
  0x35   :  { %640 = dma.done.wait [#allocation6], 3200  }
  0x36   :  { %641 = vsyncadd [#allocation6], 4294964096  ;;  %v649_v0 = vmov 0.0   ;;  %vm650_vm0 = vmmov 0   ;;  %v526_v1 = vld [vmem:[#allocation5] sm:$0xff]   ;;  %v527_v2 = vld [vmem:[#allocation5 + $0x8] sm:$0xff]  }
  0x37   :  { %458 = vmatprep.subr.bf16.mxu0 %v649_v0  ;;  %474 = vmatprep.mubr.msk.bf16.mxu0 %vm650_vm0, %v649_v0  ;;  %v528_v3 = vld [vmem:[#allocation5 + $0x10] sm:$0xff]   ;;  %v534_v4 = vld [vmem:[#allocation5 + $0x40] sm:$0xff]   ;;  %v529_v5 = vld [vmem:[#allocation5 + $0x18] sm:$0xff]   ;;  %s651_s2 = smov [#allocation8]  }
  0x38   :  { %478 = vmatprep.subr.bf16.mxu1 %v649_v0  ;;  %494 = vmatprep.mubr.msk.bf16.mxu1 %vm650_vm0, %v649_v0  ;;  %v535_v6 = vld [vmem:[#allocation5 + $0x48] sm:$0xff]   ;;  %v530_v7 = vld [vmem:[#allocation5 + $0x20] sm:$0xff]   ;;  %v536_v8 = vld [vmem:[#allocation5 + $0x50] sm:$0xff]   ;;  %s394_s21 = sshll.u32 %s651_s2, 4  ;;  %s395_s21 = int_to_ptr.vmem [resolvable:$true] %s394_s21 }
  0x39   :  { %459 = vmatpush3.bf16.msra.mxu0 %v526_v1  ;;  %479 = vmatpush3.bf16.msra.mxu1 %v534_v4  ;;  %v531_v9 = vld [vmem:[#allocation5 + $0x28] sm:$0xff]   ;;  %v537_v10 = vld [vmem:[#allocation5 + $0x58] sm:$0xff]   ;;  %v532_v11 = vld [vmem:[#allocation5 + $0x30] sm:$0xff]   ;;  %s616_s22 = scalar_lea.vmem %s395_s21, 128  ;;  %p621_p11 = scmp.lt.s32.totalorder %s395_s21, %s395_s21 }
  0x3a   :  { %460 = vmatprep.subr.bf16.mxu0 %v649_v0  ;;  %480 = vmatprep.subr.bf16.mxu1 %v649_v0  ;;  %v538_v12 = vld [vmem:[#allocation5 + $0x60] sm:$0xff]   ;;  %v533_v13 = vld [vmem:[#allocation5 + $0x38] sm:$0xff]   ;;  %v539_v14 = vld [vmem:[#allocation5 + $0x68] sm:$0xff]   ;;  %p617_p10 = scmp.ne.s32.totalorder %s395_s21, %s616_s22  ;;  %p622_p12 = scmp.lt.s32.totalorder %s616_s22, %s616_s22 }
  0x3b   :  { %v53_v15 = vld [vmem:[#allocation2] sm:$0xf]  ;;  %v540_v16 = vld [vmem:[#allocation5 + $0x70] sm:$0xff]   ;;  %v542_v18 = vld [vmem:[#allocation5 + $0x80] sm:$0xff]  }
  0x3c   :  { %v541_v17 = vld [vmem:[#allocation5 + $0x78] sm:$0xff]   ;;  %v543_v19 = vld [vmem:[#allocation5 + $0x88] sm:$0xff]   ;;  %v544_v20 = vld [vmem:[#allocation5 + $0x90] sm:$0xff]   ;;  %p623_p13 = por %p622_p12, %p621_p11 }
  0x3d   :  { %461 = vmatpush3.bf16.msra.mxu0 %v527_v2  ;;  %481 = vmatpush3.bf16.msra.mxu1 %v535_v6  ;;  %v545_v21 = vld [vmem:[#allocation5 + $0x98] sm:$0xff]   ;;  %v546_v22 = vld [vmem:[#allocation5 + $0xa0] sm:$0xff]   ;;  %v547_v23 = vld [vmem:[#allocation5 + $0xa8] sm:$0xff]  }
  0x3e   :  { %462 = vmatprep.subr.bf16.mxu0 %v649_v0  ;;  %482 = vmatprep.subr.bf16.mxu1 %v649_v0  ;;  %v404_v24 = vld [vmem:[#allocation7] ss:$0 sm:$0xff]  ;;  %v548_v32 = vld [vmem:[#allocation5 + $0xb0] sm:$0xff]   ;;  %v549_v33 = vld [vmem:[#allocation5 + $0xb8] sm:$0xff]   ;;  %p624_p0 = pnand %p623_p13, %p617_p10 }
  0x3f   :  { %v413_v34 = vld [vmem:[#allocation7 + $0x1] ss:$0 sm:$0xff]  ;;  %v422_v42 = vld [vmem:[#allocation7 + $0x2] ss:$0 sm:$0xff] }
  0x41   :  { %463 = vmatpush3.bf16.msra.mxu0 %v528_v3  ;;  %483 = vmatpush3.bf16.msra.mxu1 %v536_v8 }
  0x42   :  { %464 = vmatprep.subr.bf16.mxu0 %v649_v0  ;;  %484 = vmatprep.subr.bf16.mxu1 %v649_v0 }
  0x45   :  { %465 = vmatpush3.bf16.msra.mxu0 %v529_v5  ;;  %485 = vmatpush3.bf16.msra.mxu1 %v537_v10 }
  0x46   :  { %466 = vmatprep.subr.bf16.mxu0 %v649_v0  ;;  %486 = vmatprep.subr.bf16.mxu1 %v649_v0 }
  0x49   :  { %467 = vmatpush3.bf16.msra.mxu0 %v530_v7  ;;  %487 = vmatpush3.bf16.msra.mxu1 %v538_v12 }
  0x4a   :  { %468 = vmatprep.subr.bf16.mxu0 %v649_v0  ;;  %488 = vmatprep.subr.bf16.mxu1 %v649_v0 }
  0x4d   :  { %469 = vmatpush3.bf16.msra.mxu0 %v531_v9  ;;  %489 = vmatpush3.bf16.msra.mxu1 %v539_v14 }
  0x4e   :  { %470 = vmatprep.subr.bf16.mxu0 %v649_v0  ;;  %490 = vmatprep.subr.bf16.mxu1 %v649_v0 }
  0x51   :  { %471 = vmatpush3.bf16.msra.mxu0 %v532_v11  ;;  %491 = vmatpush3.bf16.msra.mxu1 %v540_v16 }
  0x52   :  { %472 = vmatprep.subr.bf16.mxu0 %v649_v0  ;;  %492 = vmatprep.subr.bf16.mxu1 %v649_v0 }
  0x55   :  { %473 = vmatpush3.bf16.msra.mxu0 %v533_v13  ;;  %493 = vmatpush3.bf16.msra.mxu1 %v541_v17 }
  0x56   :  { %498 = vmatprep.subr.bf16.mxu0 %v649_v0 }
  0x58   :  { %475 = vmatmul.mubr.bf16.vlgmr.msra.gmra.mrb[0].mxu0 %v53_v15 }
  0x59   :  { %514 = vmatprep.mubr.msk.bf16.mxu0 %vm650_vm0, %v649_v0  ;;  %499 = vmatpush3.bf16.msra.mxu0 %v542_v18 }
  0x5a   :  { %500 = vmatprep.subr.bf16.mxu0 %v649_v0 }
  0x5d   :  { %501 = vmatpush3.bf16.msra.mxu0 %v543_v19 }
  0x5e   :  { %502 = vmatprep.subr.bf16.mxu0 %v649_v0 }
  0x61   :  { %503 = vmatpush3.bf16.msra.mxu0 %v544_v20 }
  0x62   :  { %504 = vmatprep.subr.bf16.mxu0 %v649_v0 }
  0x65   :  { %505 = vmatpush3.bf16.msra.mxu0 %v545_v21 }
  0x66   :  { %506 = vmatprep.subr.bf16.mxu0 %v649_v0 }
  0x69   :  { %507 = vmatpush3.bf16.msra.mxu0 %v546_v22 }
  0x6a   :  { %508 = vmatprep.subr.bf16.mxu0 %v649_v0 }
  0x6d   :  { %509 = vmatpush3.bf16.msra.mxu0 %v547_v23 }
  0x6e   :  { %510 = vmatprep.subr.bf16.mxu0 %v649_v0 }
  0x71   :  { %511 = vmatpush3.bf16.msra.mxu0 %v548_v32 }
  0x72   :  { %512 = vmatprep.subr.bf16.mxu0 %v649_v0 }
  0x75   :  { %513 = vmatpush3.bf16.msra.mxu0 %v549_v33 }
 0x12b   :  { %v157_v25 = vpop.f32.mrb[0].mxu0 }
 0x12c   :  { %v158_v26 = vadd.f32 %v404_v24, %v157_v25  ;;  %v476_v27 = vpop.f32.mrb[1].mxu0 }
 0x12d   :  { %v160_v28 = vpop.f32.mrb[2].mxu0 }
 0x12e   :  { %v163_v29 = vmax.f32 %v158_v26, 0.0  ;;  %v477_v30 = vpop.f32.mrb[3].mxu0 }
 0x130   :  { %v164_v31 = vpack.c.bf16 %v163_v29, %v163_v29 }
 0x132   :  { %495 = vmatmul.mubr.bf16.vlgmr.msra.gmra.mrb[0].mxu1 %v164_v31 }
 0x205   :  { %v269_v35 = vpop.f32.mrb[0].mxu1 }
 0x206   :  { %v270_v36 = vadd.f32 %v413_v34, %v269_v35  ;;  %v496_v37 = vpop.f32.mrb[1].mxu1 }
 0x207   :  { %v272_v38 = vpop.f32.mrb[2].mxu1 }
 0x208   :  { %v275_v39 = vmax.f32 %v270_v36, 0.0  ;;  %v497_v40 = vpop.f32.mrb[3].mxu1 }
 0x20a   :  { %v276_v41 = vpack.c.bf16 %v275_v39, %v275_v39 }
 0x20c   :  { %515 = vmatmul.mubr.bf16.vlgmr.msra.gmra.mrb[4].mxu0 %v276_v41 }
 0x2df   :  { %v381_v43 = vpop.f32.mrb[4].mxu0 }
 0x2e0   :  { %v382_v44 = vadd.f32 %v422_v42, %v381_v43  ;;  %v516_v45 = vpop.f32.mrb[5].mxu0 }
 0x2e1   :  { %v384_v46 = vpop.f32.mrb[6].mxu0 }
 0x2e2   :  { %387 = vst [vmem:[#allocation8] sm:$0xff] %v382_v44  ;;  %v517_v47 = vpop.f32.mrb[7].mxu0 }
 0x2e3   :  { %627 = shalt.err (!%p624_p0)
}
 0x2e4   :  { %s628_s25 = scalar_lea.hbm %s753_s3, 128 }
 0x2e5   :  { %p629_p1 = scmp.ne.s32.totalorder %s753_s3, %s628_s25  ;;  %p632_p2 = scmp.lt.u32.totalorder %s628_s25, %s753_s3 }
 0x2e7   :  { %p634_p3 = pnand %p632_p2, %p629_p1 }
 0x2e9   :  { %637 = shalt.err (!%p634_p3)
}
 0x2ea   :  { %397 = dma.vmem_to_hbm [thread:$0]  %s395_s21, 128, %s753_s3, [#allocation4]  }
 0x2eb   :  { %642 = dma.done.wait [#allocation4], 128  }
 0x2ec   :  { %643 = vsyncadd [#allocation4], 4294967168 }
 0x2ed   :  { %401 = vsyncpa [#allocation3], 1 }
 0x2ee   :  { %402 = vsyncpa [#allocation6], 1 }
 0x2ef   :  { %403 = vsyncpa [#allocation4], 1 }

</bundles_post_ra>
